<compile_context>
chip_gen: v5e
topology: v5e:2x2
jax: 0.10.0
libtpu: 0.0.40
codegen_flags: <defaults>
</compile_context>

<pallas_src>
import numpy as np
import jax
import jax.numpy as jnp
from jax.experimental import pallas as pl
from jax.experimental.pallas import tpu as pltpu

SPLIT_SIZES = (1, 1, 8, 8)
CAT_ORDER = (1, 3, 0, 2)          # cat([v2, v4, v1, v3])
W = sum(SPLIT_SIZES)              # 18

GROUPS = 64                       # 64 * 18 = 1152 lanes = 9 full vregs
PACKED_W = GROUPS * W             # 1152 (lane-dense: multiple of 128)
MAX_TILE_G = 512                  # 512 * 1152 * 4 B = 2.25 MiB per f32 block
MAX_TILE_ROWS = 512               # narrow path only ever sees small inputs

# --- derive permutation / roll shifts / selector from the split spec --------
_starts = np.cumsum((0,) + SPLIT_SIZES)[:-1]                       # chunk starts (input)
_PERM = np.concatenate(
    [np.arange(_starts[o], _starts[o] + SPLIT_SIZES[o]) for o in CAT_ORDER])
assert sorted(_PERM.tolist()) == list(range(W)), "split/cat is not a permutation"

_dst_starts = np.cumsum([0] + [SPLIT_SIZES[o] for o in CAT_ORDER])[:-1]
# roll(x, s)[l] == x[l - s]  =>  per output chunk: s = dst_start - src_start
_SHIFTS = tuple(int(d) - int(_starts[o]) for d, o in zip(_dst_starts, CAT_ORDER))
# chunk id per destination lane (period-W pattern)
_CHUNK_OF_DST = np.concatenate(
    [np.full(SPLIT_SIZES[o], k, np.int32) for k, o in enumerate(CAT_ORDER)])
# Static no-wrap check: every selected lane's source stays inside its own
# W-lane group, so a circular roll over the packed PACKED_W lanes never pulls
# data from a neighbouring group (the roll-based permutation is exact).
for _d in range(W):
    _k = int(_CHUNK_OF_DST[_d])
    assert 0 <= _d - _SHIFTS[_k] < W and _d - _SHIFTS[_k] == _PERM[_d]

# (1, PACKED_W) int32 selector (period-18 pattern tiled over 64 groups)
_SEL_NP = np.tile(_CHUNK_OF_DST, GROUPS)[None, :]
# input slices, in output order, for the narrow kernel
_SRC_SLICES = tuple((int(_starts[o]), int(SPLIT_SIZES[o])) for o in CAT_ORDER)


def _split_cat_packed_kernel(sel_ref, x_ref, o_ref):
    """x_ref / o_ref: (tile_g, 1152) lane-dense tiles. sel_ref: (1, 1152) i32."""
    x = x_ref[...]
    sel = sel_ref[...]
    # XLU lane rotations (vrot) -- one shifted copy per output chunk.
    a = pltpu.roll(x, _SHIFTS[0] % PACKED_W, axis=1)   # v2: dst r==0
    b = pltpu.roll(x, _SHIFTS[1] % PACKED_W, axis=1)   # v4: dst r in [1,8]
    c = pltpu.roll(x, _SHIFTS[2] % PACKED_W, axis=1)   # v1: dst r==9
    d = pltpu.roll(x, _SHIFTS[3] % PACKED_W, axis=1)   # v3: dst r in [10,17]
    # Flattened select tree: the two inner selects are independent.
    lo = sel <= 1
    is0 = sel == 0
    is2 = sel == 2
    o_ref[...] = jnp.where(lo, jnp.where(is0, a, b), jnp.where(is2, c, d))


def _split_cat_rows_kernel(x_ref, o_ref):
    """Narrow path ((tile_r, 18) tiles): assemble the permuted row in
    registers and issue a single full-width store."""
    x = x_ref[...]
    o_ref[...] = jnp.concatenate([x[:, s:s + n] for s, n in _SRC_SLICES], axis=1)


def _pick_tile_g(g):
    """Block height (in 1152-lane super rows) for the packed kernel."""
    if g <= 8:
        return g                       # full array (tiny input), grid = 1
    # >= 2 grid steps (dual-TC sharding on v7x + DMA/compute overlap), big
    # blocks (<= 2.25 MiB), sublane-aligned (multiple of 8).
    tile = min(MAX_TILE_G, pl.cdiv(g, 2))
    tile = min(MAX_TILE_G, ((tile + 7) // 8) * 8)
    return tile


def _split_cat_packed(x2d):
    rows, w = x2d.shape
    g = rows // GROUPS
    xp = x2d.reshape(g, PACKED_W)      # contiguous reinterpretation (free)
    tile_g = _pick_tile_g(g)
    outp = pl.pallas_call(
        _split_cat_packed_kernel,
        out_shape=jax.ShapeDtypeStruct((g, PACKED_W), x2d.dtype),
        grid=(pl.cdiv(g, tile_g),),
        in_specs=[
            pl.BlockSpec((1, PACKED_W), lambda i: (0, 0)),        # selector (fetched once)
            pl.BlockSpec((tile_g, PACKED_W), lambda i: (i, 0)),   # data
        ],
        out_specs=pl.BlockSpec((tile_g, PACKED_W), lambda i: (i, 0)),
        compiler_params=pltpu.CompilerParams(
            dimension_semantics=("parallel",)),
    )(jnp.asarray(_SEL_NP), xp)
    return outp.reshape(rows, w)


def _split_cat_rows(x2d):
    rows, w = x2d.shape
    tile_r = rows if rows <= MAX_TILE_ROWS else MAX_TILE_ROWS
    return pl.pallas_call(
        _split_cat_rows_kernel,
        out_shape=jax.ShapeDtypeStruct((rows, w), x2d.dtype),
        grid=(pl.cdiv(rows, tile_r),),
        in_specs=[pl.BlockSpec((tile_r, w), lambda i: (i, 0))],
        out_specs=pl.BlockSpec((tile_r, w), lambda i: (i, 0)),
        compiler_params=pltpu.CompilerParams(
            dimension_semantics=("parallel",)),
    )(x2d)


@jax.jit
def split_cat_pallas(x):
    """x: (N, C, H, W) with W == 18. Returns cat([v2, v4, v1, v3], -1)."""
    n, c, h, w = x.shape
    assert w == W, f"last dim must be {W} (got {w})"
    rows = n * c * h
    x2d = x.reshape(rows, w)
    rows_main = (rows // GROUPS) * GROUPS
    if rows_main == rows:
        out2d = _split_cat_packed(x2d)
    elif rows_main == 0:
        out2d = _split_cat_rows(x2d)
    else:
        # Keep the bulk of the data on the lane-dense path; only the <= 63-row
        # remainder goes through the narrow (masked-store) kernel.
        head = _split_cat_packed(x2d[:rows_main])
        tail = _split_cat_rows(x2d[rows_main:])
        out2d = jnp.concatenate([head, tail], axis=0)
    return out2d.reshape(n, c, h, w)


def model_forward(x1):
    """Matches Model.forward: runs split+cat, then returns True.

    In the original module v5 is dead code (forward returns True); it is
    returned here only so the kernel result can be validated.
    """
    v5 = split_cat_pallas(x1)
    return True, v5


def _reference(x):
    v1 = x[..., 0:1]
    v2 = x[..., 1:2]
    v3 = x[..., 2:10]
    v4 = x[..., 10:18]
    return jnp.concatenate([v2, v4, v1, v3], axis=-1)


if __name__ == "__main__":
    key = jax.random.PRNGKey(0)

    # Primary small shape (lane-dense fast path): rows = 2*4*16 = 128.
    x1 = jax.random.normal(key, (2, 4, 16, W), dtype=jnp.float32)
    result, v5 = model_forward(x1)
    v5 = jax.block_until_ready(v5)
    assert result is True
    # Pure permutation -> must be bit-exact.
    assert bool(jnp.array_equal(v5, _reference(x1))), "fast-path mismatch"

    # Module's "real" shape (rows = 2048 -> g = 32, multi-step pipelined grid).
    x2 = jax.random.normal(jax.random.PRNGKey(1), (1, 64, 32, W),
                           dtype=jnp.float32)
    _, v5b = model_forward(x2)
    v5b = jax.block_until_ready(v5b)
    assert bool(jnp.array_equal(v5b, _reference(x2))), "pipelined-path mismatch"

    # Narrow path only (rows = 24 < 64).
    x3 = jax.random.normal(jax.random.PRNGKey(2), (1, 3, 8, W),
                           dtype=jnp.float32)
    _, v5c = model_forward(x3)
    v5c = jax.block_until_ready(v5c)
    assert bool(jnp.array_equal(v5c, _reference(x3))), "narrow-path mismatch"

    # Mixed head/tail path (rows = 80 -> 64 packed + 16 narrow).
    x4 = jax.random.normal(jax.random.PRNGKey(3), (1, 5, 16, W),
                           dtype=jnp.float32)
    _, v5d = model_forward(x4)
    v5d = jax.block_until_ready(v5d)
    assert bool(jnp.array_equal(v5d, _reference(x4))), "head/tail mismatch"

    print("KERNEL_OK")
</pallas_src>

<mosaic_0001>
module attributes {stable_mosaic.version = 11 : i64} {
  func.func @_split_cat_packed_kernel(%arg0: i32, %arg1: memref<1x1152xi32, #tpu.memory_space<vmem>>, %arg2: memref<2x1152xf32, #tpu.memory_space<vmem>>, %arg3: memref<2x1152xf32, #tpu.memory_space<vmem>>) attributes {dimension_semantics = [#tpu.dimension_semantics<parallel>], iteration_bounds = array<i64: 1>, scalar_prefetch = 0 : i64, scratch_operands = 0 : i64, tpu.core_type = #tpu.core_type<tc>, window_params = [{pipeline_mode = #tpu.pipeline_mode<synchronous>, transform_indices = @transform_0, window_bounds = array<i64: 1, 1152>}, {transform_indices = @transform_1, window_bounds = array<i64: 2, 1152>}, {transform_indices = @transform_2, window_bounds = array<i64: 2, 1152>}]} {
    %c0 = arith.constant 0 : index
    %c0_0 = arith.constant 0 : index
    %0 = vector.load %arg2[%c0, %c0_0] : memref<2x1152xf32, #tpu.memory_space<vmem>>, vector<2x1152xf32>
    %c0_1 = arith.constant 0 : index
    %c0_2 = arith.constant 0 : index
    %1 = vector.load %arg1[%c0_1, %c0_2] : memref<1x1152xi32, #tpu.memory_space<vmem>>, vector<1x1152xi32>
    %c1151_i32 = arith.constant 1151 : i32
    %2 = tpu.dynamic_rotate %0 by %c1151_i32 dim 1 : vector<2x1152xf32>, i32 -> vector<2x1152xf32>
    %c1143_i32 = arith.constant 1143 : i32
    %3 = tpu.dynamic_rotate %0 by %c1143_i32 dim 1 : vector<2x1152xf32>, i32 -> vector<2x1152xf32>
    %c9_i32 = arith.constant 9 : i32
    %4 = tpu.dynamic_rotate %0 by %c9_i32 dim 1 : vector<2x1152xf32>, i32 -> vector<2x1152xf32>
    %c8_i32 = arith.constant 8 : i32
    %5 = tpu.dynamic_rotate %0 by %c8_i32 dim 1 : vector<2x1152xf32>, i32 -> vector<2x1152xf32>
    %c1_i32 = arith.constant 1 : i32
    %6 = vector.broadcast %c1_i32 : i32 to vector<1x1152xi32>
    %7 = arith.cmpi sle, %1, %6 : vector<1x1152xi32>
    %c0_i32 = arith.constant 0 : i32
    %8 = vector.broadcast %c0_i32 : i32 to vector<1x1152xi32>
    %9 = arith.cmpi eq, %1, %8 : vector<1x1152xi32>
    %c2_i32 = arith.constant 2 : i32
    %10 = vector.broadcast %c2_i32 : i32 to vector<1x1152xi32>
    %11 = arith.cmpi eq, %1, %10 : vector<1x1152xi32>
    %12 = vector.shape_cast %9 : vector<1x1152xi1> to vector<1x1152xi1>
    %13 = vector.broadcast %12 : vector<1x1152xi1> to vector<2x1152xi1>
    %14 = arith.select %13, %2, %3 : vector<2x1152xi1>, vector<2x1152xf32>
    %15 = vector.shape_cast %11 : vector<1x1152xi1> to vector<1x1152xi1>
    %16 = vector.broadcast %15 : vector<1x1152xi1> to vector<2x1152xi1>
    %17 = arith.select %16, %4, %5 : vector<2x1152xi1>, vector<2x1152xf32>
    %18 = vector.shape_cast %7 : vector<1x1152xi1> to vector<1x1152xi1>
    %19 = vector.broadcast %18 : vector<1x1152xi1> to vector<2x1152xi1>
    %20 = arith.select %19, %14, %17 : vector<2x1152xi1>, vector<2x1152xf32>
    %c0_3 = arith.constant 0 : index
    %c0_4 = arith.constant 0 : index
    %21 = vector.load %arg3[%c0_3, %c0_4] : memref<2x1152xf32, #tpu.memory_space<vmem>>, vector<2x1152xf32>
    tpu.vector_store %arg3[%c0_3, %c0_4], %20 {strides = array<i32>} : memref<2x1152xf32, #tpu.memory_space<vmem>>, vector<2x1152xf32>,
    return
  }
  func.func @transform_0(%arg0: i32) -> (i32, i32) {
    %c0_i32 = arith.constant 0 : i32
    %c0_i32_0 = arith.constant 0 : i32
    %c0_i32_1 = arith.constant 0 : i32
    return %c0_i32, %c0_i32_0 : i32, i32
  }
  func.func @transform_1(%arg0: i32) -> (i32, i32) {
    %c0_i32 = arith.constant 0 : i32
    %c0_i32_0 = arith.constant 0 : i32
    return %arg0, %c0_i32 : i32, i32
  }
  func.func @transform_2(%arg0: i32) -> (i32, i32) {
    %c0_i32 = arith.constant 0 : i32
    %c0_i32_0 = arith.constant 0 : i32
    return %arg0, %c0_i32 : i32, i32
  }
}

</mosaic_0001>

<bundles_post_ra>
// kernel: split_cat_pallas.1
= control target key start
LH: loop header
LB: loop body
LE: loop exit
PB: predicated region body
PF: predicated region fallthrough
CT: control target
= control target key end

     0   :  { %s351_s15 = smov 127   ;;  %s353_s16 = smov 9   ;;  %v59_v40 = vlaneseq  ;;  %v355_v60 = vmov 0   ;;  %s779_s1 = inlined_call_operand.vmem [shape: f32[2,1152], index: 1, kind: input, shape index: {}]   ;;  %s780_s0 = inlined_call_operand.vmem [shape: s32[1,1152], index: 0, kind: input, shape index: {}]   ;;  %s781_s2 = inlined_call_operand.vmem [shape: f32[2,1152], index: 2, kind: output, shape index: {}]  }
   0x1   :  { %v11_v0 = vld [vmem:[%s779_s1] sm:$0xff]  ;;  %v12_v1 = vld [vmem:[%s779_s1 + $0x8] sm:$0xff]  ;;  %v380_v2 = vld [vmem:[%s779_s1 + $0x10] sm:$0x3]  ;;  %s352_s1 = smov 119   ;;  %s354_s17 = smov 8  }
   0x2   :  { %19 = vst [vmem:[#allocation1] ss:$4 sm:$0xff] %v11_v0  ;;  %v386_v41 = vand.u32 127, %v59_v40  ;;  %v14_v55 = vld [vmem:[%s780_s0] sm:$0xff]  ;;  %v421_v56 = vld [vmem:[%s780_s0 + $0x8] sm:$0x1] }
   0x3   :  { %21 = vst [vmem:[#allocation1 + $0x20] ss:$4 sm:$0xff] %v12_v1  ;;  %vm223_vm1 = vcmp.eq.s32.totalorder %v14_v55, 0  ;;  %vm224_vm2 = vcmp.eq.s32.totalorder %v421_v56, 0  ;;  %vm225_vm6 = vcmp.eq.s32.totalorder %v14_v55, 2  ;;  %vm221_vm7 = vcmp.le.s32.totalorder %v14_v55, 1 }
   0x4   :  { %vm61_vm0 = vcmp.lt.s32.totalorder %v386_v41, 127  ;;  %v427_v61 = vsel %vm223_vm1, 1, %v355_v60  ;;  %v228_v62 = vsel %vm224_vm2, 1, %v355_v60  ;;  %vm111_vm3 = vcmp.lt.s32.totalorder %v386_v41, 119 }
   0x5   :  { %vm784_vm14 = vcmp.lt.s32.totalorder %v386_v41, 9  ;;  %vm782_vm15 = vcmp.lt.s32.totalorder %v386_v41, 8 }
   0x9   :  { %v24_v3 = vld.sshfl [vmem:[#allocation1 + $0x10] sm:$0xff pattern:$0x73625140]  ;;  %v22_v4 = vld.sshfl [vmem:[#allocation1] sm:$0xff pattern:$0x73625140] }
   0xa   :  { %45 = vrot.lane.b32.xlu1 %v24_v3, %s351_s15  ;;  %41 = vrot.lane.b32.xlu0 %v22_v4, %s351_s15  ;;  %v26_v5 = vld.sshfl [vmem:[#allocation1 + $0x20] sm:$0xff pattern:$0x73625140]  ;;  %v25_v6 = vld.sshfl [vmem:[#allocation1 + $0x18] sm:$0xff pattern:$0x73625140] }
   0xb   :  { %49 = vrot.lane.b32.xlu2 %v26_v5, %s351_s15  ;;  %v23_v7 = vld.sshfl [vmem:[#allocation1 + $0x8] sm:$0xff pattern:$0x73625140]  ;;  %v29_v9 = vld.sshfl [vmem:[#allocation1 + $0x38] sm:$0xff pattern:$0x73625140] }
   0xc   :  { %30 = vst [vmem:[#allocation1] ss:$4 sm:$0xff] %v380_v2  ;;  %v27_v8 = vld.sshfl [vmem:[#allocation1 + $0x28] sm:$0xff pattern:$0x73625140]  ;;  %v237_v3 = vperm.slane %v228_v62, 0 }
   0xd   :  { %v28_v10 = vld.sshfl [vmem:[#allocation1 + $0x30] sm:$0xff pattern:$0x73625140] }
   0xe   :  { %73 = vst [vmem:[#allocation1 + $0x20] ss:$4 sm:$0xff] %v12_v1  ;;  %vm448_vm5 = vcmp.eq.s32.totalorder %v237_v3, 1 }
  0x12   :  { %47 = vrot.lane.b32.xlu1 %v25_v6, %s351_s15  ;;  %43 = vrot.lane.b32.xlu0 %v23_v7, %s351_s15 }
  0x13   :  { %51 = vrot.lane.b32.xlu2 %v27_v8, %s351_s15  ;;  %v31_v11 = vld.sshfl [vmem:[#allocation1] sm:$0xff pattern:$0x73625140] }
  0x14   :  { %71 = vst [vmem:[#allocation1] ss:$4 sm:$0xff] %v11_v0 }
  0x15   :  { %v78_v12 = vld.sshfl [vmem:[#allocation1 + $0x20] sm:$0xff pattern:$0x73625140]  ;;  %v79_v13 = vld.sshfl [vmem:[#allocation1 + $0x28] sm:$0xff pattern:$0x73625140] }
  0x16   :  { %v81_v14 = vld.sshfl [vmem:[#allocation1 + $0x38] sm:$0xff pattern:$0x73625140]  ;;  %v80_v15 = vld.sshfl [vmem:[#allocation1 + $0x30] sm:$0xff pattern:$0x73625140] }
  0x17   :  { %123 = vst [vmem:[#allocation1 + $0x20] ss:$4 sm:$0xff] %v12_v1 }
  0x1a   :  { %55 = vrot.lane.b32.xlu1 %v29_v9, %s351_s15  ;;  %53 = vrot.lane.b32.xlu0 %v28_v10, %s351_s15 }
  0x1b   :  { %57 = vrot.lane.b32.xlu2 %v31_v11, %s351_s15  ;;  %v75_v16 = vld.sshfl [vmem:[#allocation1 + $0x8] sm:$0xff pattern:$0x73625140]  ;;  %v74_v17 = vld.sshfl [vmem:[#allocation1] sm:$0xff pattern:$0x73625140] }
  0x1c   :  { %v76_v18 = vld.sshfl [vmem:[#allocation1 + $0x10] sm:$0xff pattern:$0x73625140]  ;;  %v77_v19 = vld.sshfl [vmem:[#allocation1 + $0x18] sm:$0xff pattern:$0x73625140] }
  0x1d   :  { %82 = vst [vmem:[#allocation1] ss:$4 sm:$0xff] %v380_v2 }
  0x1e   :  { %v128_v21 = vld.sshfl [vmem:[#allocation1 + $0x20] sm:$0xff pattern:$0x73625140]  ;;  %v129_v22 = vld.sshfl [vmem:[#allocation1 + $0x28] sm:$0xff pattern:$0x73625140] }
  0x1f   :  { %v131_v23 = vld.sshfl [vmem:[#allocation1 + $0x38] sm:$0xff pattern:$0x73625140]  ;;  %v130_v24 = vld.sshfl [vmem:[#allocation1 + $0x30] sm:$0xff pattern:$0x73625140] }
  0x20   :  { %173 = vst [vmem:[#allocation1 + $0x20] ss:$4 sm:$0xff] %v12_v1 }
  0x22   :  { %95 = vrot.lane.b32.xlu1 %v75_v16, %s352_s1  ;;  %93 = vrot.lane.b32.xlu0 %v74_v17, %s352_s1 }
  0x23   :  { %97 = vrot.lane.b32.xlu2 %v76_v18, %s352_s1 }
  0x24   :  { %v83_v20 = vld.sshfl [vmem:[#allocation1] sm:$0xff pattern:$0x73625140] }
  0x25   :  { %121 = vst [vmem:[#allocation1] ss:$4 sm:$0xff] %v11_v0 }
  0x27   :  { %v179_v34 = vld.sshfl [vmem:[#allocation1 + $0x28] sm:$0xff pattern:$0x73625140]  ;;  %v178_v35 = vld.sshfl [vmem:[#allocation1 + $0x20] sm:$0xff pattern:$0x73625140] }
  0x28   :  { %v180_v36 = vld.sshfl [vmem:[#allocation1 + $0x30] sm:$0xff pattern:$0x73625140]  ;;  %v181_v37 = vld.sshfl [vmem:[#allocation1 + $0x38] sm:$0xff pattern:$0x73625140] }
  0x2a   :  { %101 = vrot.lane.b32.xlu1 %v78_v12, %s352_s1  ;;  %99 = vrot.lane.b32.xlu0 %v77_v19, %s352_s1 }
  0x2b   :  { %103 = vrot.lane.b32.xlu2 %v79_v13, %s352_s1 }
  0x2c   :  { %v125_v25 = vld.sshfl [vmem:[#allocation1 + $0x8] sm:$0xff pattern:$0x73625140]  ;;  %v124_v26 = vld.sshfl [vmem:[#allocation1] sm:$0xff pattern:$0x73625140] }
  0x2d   :  { %v126_v27 = vld.sshfl [vmem:[#allocation1 + $0x10] sm:$0xff pattern:$0x73625140]  ;;  %v127_v28 = vld.sshfl [vmem:[#allocation1 + $0x18] sm:$0xff pattern:$0x73625140] }
  0x2e   :  { %132 = vst [vmem:[#allocation1] ss:$4 sm:$0xff] %v380_v2 }
  0x32   :  { %107 = vrot.lane.b32.xlu1 %v81_v14, %s352_s1  ;;  %105 = vrot.lane.b32.xlu0 %v80_v15, %s352_s1 }
  0x33   :  { %109 = vrot.lane.b32.xlu2 %v83_v20, %s352_s1 }
  0x35   :  { %v133_v29 = vld.sshfl [vmem:[#allocation1] sm:$0xff pattern:$0x73625140] }
  0x36   :  { %171 = vst [vmem:[#allocation1] ss:$4 sm:$0xff] %v11_v0 }
  0x3a   :  { %145 = vrot.lane.b32.xlu1 %v125_v25, %s353_s16  ;;  %143 = vrot.lane.b32.xlu0 %v124_v26, %s353_s16  ;;  %v233_v25 = vperm.slane %v427_v61, 4  ;;  %v231_v26 = vperm.slane %v427_v61, 2 }
  0x3b   :  { %147 = vrot.lane.b32.xlu2 %v126_v27, %s353_s16  ;;  %v232_v27 = vperm.slane %v427_v61, 3 }
  0x3c   :  { %vm490_vm9 = vcmp.eq.s32.totalorder %v233_v25, 1  ;;  %vm501_vm10 = vcmp.eq.s32.totalorder %v231_v26, 1 }
  0x3d   :  { %v174_v30 = vld.sshfl [vmem:[#allocation1] sm:$0xff pattern:$0x73625140]  ;;  %v176_v31 = vld.sshfl [vmem:[#allocation1 + $0x10] sm:$0xff pattern:$0x73625140] }
  0x3e   :  { %v175_v32 = vld.sshfl [vmem:[#allocation1 + $0x8] sm:$0xff pattern:$0x73625140]  ;;  %v177_v33 = vld.sshfl [vmem:[#allocation1 + $0x18] sm:$0xff pattern:$0x73625140] }
  0x3f   :  { %182 = vst [vmem:[#allocation1] ss:$4 sm:$0xff] %v380_v2  ;;  %v229_v2 = vperm.slane %v427_v61, 0  ;;  %vm505_vm11 = vcmp.eq.s32.totalorder %v232_v27, 1 }
  0x41   :  { %vm444_vm4 = vcmp.eq.s32.totalorder %v229_v2, 1 }
  0x42   :  { %151 = vrot.lane.b32.xlu1 %v128_v21, %s353_s16  ;;  %149 = vrot.lane.b32.xlu0 %v127_v28, %s353_s16  ;;  %v236_v28 = vperm.slane %v427_v61, 7 }
  0x43   :  { %153 = vrot.lane.b32.xlu2 %v129_v22, %s353_s16 }
  0x44   :  { %vm528_vm12 = vcmp.eq.s32.totalorder %v236_v28, 1 }
  0x46   :  { %v183_v38 = vld.sshfl [vmem:[#allocation1] sm:$0xff pattern:$0x73625140] }
  0x4a   :  { %157 = vrot.lane.b32.xlu1 %v131_v23, %s353_s16  ;;  %155 = vrot.lane.b32.xlu0 %v130_v24, %s353_s16  ;;  %v230_v24 = vperm.slane %v427_v61, 1 }
  0x4b   :  { %193 = vrot.lane.b32.xlu2 %v174_v30, %s354_s17 }
  0x4c   :  { %vm486_vm8 = vcmp.eq.s32.totalorder %v230_v24, 1 }
  0x52   :  { %197 = vrot.lane.b32.xlu1 %v176_v31, %s354_s17  ;;  %195 = vrot.lane.b32.xlu0 %v175_v32, %s354_s17 }
  0x53   :  { %199 = vrot.lane.b32.xlu2 %v177_v33, %s354_s17 }
  0x5a   :  { %203 = vrot.lane.b32.xlu1 %v179_v34, %s354_s17  ;;  %201 = vrot.lane.b32.xlu0 %v178_v35, %s354_s17  ;;  %v499_v34 = vsel %vm225_vm6, 1, %v355_v60  ;;  %vm785_vm6 = vcmask 1045508  }
  0x5b   :  { %205 = vrot.lane.b32.xlu2 %v180_v36, %s354_s17  ;;  %v260_v55 = vperm.slane %v499_v34, 2  ;;  %v264_v25 = vperm.slane %v499_v34, 6  ;;  %v262_v36 = vperm.slane %v499_v34, 4 }
  0x5d   :  { %vm579_vm1 = vcmp.eq.s32.totalorder %v260_v55, 1 }
  0x62   :  { %159 = vrot.lane.b32.xlu1 %v133_v29, %s353_s16  ;;  %207 = vrot.lane.b32.xlu0 %v181_v37, %s354_s17  ;;  %v234_v29 = vperm.slane %v427_v61, 5  ;;  %v235_v37 = vperm.slane %v427_v61, 6 }
  0x63   :  { %209 = vrot.lane.b32.xlu2 %v183_v38, %s354_s17 }
  0x64   :  { %vm534_vm13 = vcmp.eq.s32.totalorder %v234_v29, 1 }
  0x65   :  { %v50_v39 = vpop.permute.xlu2 %49 }
  0x6d   :  { %v52_v42 = vpop.permute.xlu2 %51 }
  0x6e   :  { %v391_v43 = vsel %vm61_vm0, %v50_v39, %v52_v42 }
  0x75   :  { %v58_v44 = vpop.permute.xlu2 %57 }
  0x7c   :  { %v46_v45 = vpop.permute.xlu1 %45  ;;  %v42_v46 = vpop.permute.xlu0 %41 }
  0x7d   :  { %v395_v47 = vsel %vm61_vm0, %v58_v44, %v42_v46  ;;  %v397_v48 = vpop.permute.xlu2 %97 }
  0x84   :  { %v48_v49 = vpop.permute.xlu1 %47  ;;  %v44_v50 = vpop.permute.xlu0 %43 }
  0x85   :  { %v401_v51 = vsel %vm61_vm0, %v48_v49, %v50_v39  ;;  %v405_v52 = vsel %vm61_vm0, %v46_v45, %v48_v49  ;;  %v409_v53 = vsel %vm61_vm0, %v44_v50, %v46_v45  ;;  %v413_v54 = vsel %vm61_vm0, %v42_v46, %v44_v50  ;;  %v423_v57 = vpop.permute.xlu2 %103 }
  0x86   :  { %v513_v39 = vsel %vm221_vm7, 1, %v355_v60  ;;  %v261_v50 = vperm.slane %v499_v34, 3 }
  0x87   :  { %v291_v55 = vperm.slane %v513_v39, 4 }
  0x8c   :  { %v56_v58 = vpop.permute.xlu1 %55  ;;  %v54_v59 = vpop.permute.xlu0 %53 }
  0x8d   :  { %v432_v63 = vsel %vm61_vm0, %v56_v58, %v58_v44  ;;  %v436_v0 = vsel %vm61_vm0, %v54_v59, %v56_v58  ;;  %v440_v1 = vsel %vm61_vm0, %v52_v42, %v54_v59  ;;  %v110_v4 = vpop.permute.xlu2 %109  ;;  %v289_v59 = vperm.slane %v513_v39, 2 }
  0x8e   :  { %vm575_vm0 = vcmp.eq.s32.totalorder %v261_v50, 1 }
  0x8f   :  { %vm298_vm7 = vcmp.eq.s32.totalorder %v289_v59, 1 }
  0x94   :  { %v96_v7 = vpop.permute.xlu1 %95  ;;  %v94_v8 = vpop.permute.xlu0 %93 }
  0x95   :  { %v454_v9 = vsel %vm111_vm3, %v94_v8, %v96_v7  ;;  %v458_v10 = vsel %vm111_vm3, %v110_v4, %v94_v8  ;;  %v148_v15 = vpop.permute.xlu2 %147  ;;  %v518_v40 = vsel %vm111_vm3, %v96_v7, %v397_v48  ;;  %v259_v7 = vperm.slane %v499_v34, 1 }
  0x96   :  { %v247_v11 = vsel %vm444_vm4, %v413_v54, %v454_v9  ;;  %v255_v12 = vsel %vm448_vm5, %v395_v47, %v458_v10  ;;  %v248_v61 = vsel %vm486_vm8, %v409_v53, %v518_v40  ;;  %v288_v8 = vperm.slane %v513_v39, 1 }
  0x97   :  { %vm642_vm5 = vcmp.eq.s32.totalorder %v291_v55, 1  ;;  %v294_v55 = vperm.slane %v513_v39, 7 }
  0x9c   :  { %v102_v13 = vpop.permute.xlu1 %101  ;;  %v100_v14 = vpop.permute.xlu0 %99 }
  0x9d   :  { %v468_v18 = vpop.permute.xlu2 %153  ;;  %v523_v42 = vsel %vm111_vm3, %v102_v13, %v423_v57  ;;  %v117_v44 = vsel %vm111_vm3, %v397_v48, %v100_v14  ;;  %v116_v46 = vsel %vm111_vm3, %v100_v14, %v102_v13  ;;  %v290_v48 = vperm.slane %v513_v39, 3 }
  0x9e   :  { %v251_v62 = vsel %vm490_vm9, %v391_v43, %v523_v42  ;;  %v249_v2 = vsel %vm501_vm10, %v405_v52, %v117_v44  ;;  %v250_v3 = vsel %vm505_vm11, %v401_v51, %v116_v46  ;;  %vm612_vm10 = vcmp.eq.s32.totalorder %v259_v7, 1 }
  0x9f   :  { %vm299_vm2 = vcmp.eq.s32.totalorder %v290_v48, 1  ;;  %vm616_vm11 = vcmp.eq.s32.totalorder %v288_v8, 1 }
  0xa4   :  { %v108_v16 = vpop.permute.xlu1 %107  ;;  %v106_v17 = vpop.permute.xlu0 %105 }
  0xa5   :  { %v474_v21 = vpop.permute.xlu2 %193  ;;  %v542_v58 = vsel %vm111_vm3, %v108_v16, %v110_v4  ;;  %v564_v4 = vsel %vm111_vm3, %v106_v17, %v108_v16  ;;  %v114_v52 = vsel %vm111_vm3, %v423_v57, %v106_v17  ;;  %vm595_vm3 = vcmp.eq.s32.totalorder %v235_v37, 1 }
  0xa6   :  { %v254_v13 = vsel %vm528_vm12, %v432_v63, %v542_v58  ;;  %v292_v37 = vperm.slane %v513_v39, 5  ;;  %v252_v48 = vsel %vm534_vm13, %v440_v1, %v114_v52  ;;  %vm630_vm13 = vcmp.eq.s32.totalorder %v264_v25, 1 }
  0xa7   :  { %vm824_vm12 = vcmp.lt.s32.totalorder %v386_v41, 8 }
  0xa8   :  { %vm825_vm4 = vmmov %vm824_vm12 }
  0xac   :  { %v470_v19 = vpop.permute.xlu1 %145  ;;  %v472_v20 = vpop.permute.xlu0 %143 }
  0xad   :  { %v510_v38 = vpop.permute.xlu2 %199  ;;  %v168_v26 = vsel %vm784_vm14, %v470_v19, %v148_v15  ;;  %v169_v1 = vsel %vm784_vm14, %v472_v20, %v470_v19 }
  0xb4   :  { %v476_v22 = vpop.permute.xlu1 %151  ;;  %v478_v23 = vpop.permute.xlu0 %149 }
  0xb5   :  { %v167_v57 = vsel %vm784_vm14, %v148_v15, %v478_v23  ;;  %v263_v15 = vperm.slane %v499_v34, 5  ;;  %v605_v44 = vpop.permute.xlu2 %205  ;;  %vm301_vm14 = vcmp.eq.s32.totalorder %v292_v37, 1 }
  0xbc   :  { %v494_v32 = vpop.permute.xlu1 %157  ;;  %v496_v33 = vpop.permute.xlu0 %155 }
  0xbd   :  { %v210_v7 = vpop.permute.xlu2 %209 }
  0xc4   :  { %v198_v16 = vpop.permute.xlu1 %197  ;;  %v196_v24 = vpop.permute.xlu0 %195 }
  0xc5   :  { %v217_v17 = vsel %vm782_vm15, %v198_v16, %v510_v38  ;;  %v218_v27 = vsel %vm782_vm15, %v196_v24, %v198_v16  ;;  %vm638_vm15 = vcmp.eq.s32.totalorder %v263_v15, 1 }
  0xc6   :  { %v279_v29 = vsel %vm575_vm0, %v167_v57, %v217_v17  ;;  %v278_v35 = vsel %vm579_vm1, %v168_v26, %v218_v27  ;;  %vm222_vm0 = vcmp.le.s32.totalorder %v421_v56, 1  ;;  %vm226_vm1 = vcmp.eq.s32.totalorder %v421_v56, 2 }
  0xc7   :  { %v308_v46 = vsel %vm299_vm2, %v250_v3, %v279_v29  ;;  %v307_v50 = vsel %vm298_vm7, %v249_v2, %v278_v35  ;;  %v293_v2 = vperm.slane %v513_v39, 6  ;;  %vm634_vm2 = vcmp.eq.s32.totalorder %v262_v36, 1 }
  0xc8   :  { %v324_v59 = vrot.slane %v308_v46, 2  ;;  %v323_v51 = vrot.slane %v307_v50, 4  ;;  %v258_v26 = vperm.slane %v499_v34, 0  ;;  %v257_v57 = vsel %vm226_vm1, 1, %v355_v60  ;;  %vm827_vm1 = vmmov %vm825_vm4 }
  0xc9   :  { %v286_v17 = vsel %vm222_vm0, 1, %v355_v60  ;;  %v219_v29 = vsel %vm824_vm12, %v474_v21, %v196_v24  ;;  %v265_v46 = vperm.slane %v499_v34, 7  ;;  %v266_v50 = vperm.slane %v257_v57, 0  ;;  %vm841_vm8 = vmmov %vm827_vm1 }
  0xca   :  { %v628_v49 = vsel %vm785_vm6, %v323_v51, %v324_v59  ;;  %vm822_vm6 = vcmp.lt.s32.totalorder %v386_v41, 9  ;;  %v277_v37 = vsel %vm612_vm10, %v169_v1, %v219_v29  ;;  %v295_v51 = vperm.slane %v286_v17, 0 }
  0xcb   :  { %v165_v19 = vsel %vm822_vm6, %v476_v22, %v468_v18  ;;  %vm823_vm7 = vmmov %vm822_vm6  ;;  %vm302_vm12 = vcmp.eq.s32.totalorder %v293_v2, 1  ;;  %vm695_vm10 = vcmp.eq.s32.totalorder %v258_v26, 1  ;;  %v306_v43 = vsel %vm616_vm11, %v248_v61, %v277_v37 }
  0xcc   :  { %v204_v52 = vpop.permute.xlu1 %203  ;;  %v202_v25 = vpop.permute.xlu0 %201  ;;  %v166_v27 = vsel %vm823_vm7, %v478_v23, %v476_v22  ;;  %vm826_vm6 = vmmov %vm825_vm4  ;;  %v287_v23 = vperm.slane %v513_v39, 0  ;;  %vm714_vm9 = vcmp.eq.s32.totalorder %v266_v50, 1  ;;  %vm718_vm0 = vcmp.eq.s32.totalorder %v294_v55, 1 }
  0xcd   :  { %v215_v35 = vsel %vm825_vm4, %v202_v25, %v204_v52  ;;  %v216_v36 = vsel %vm826_vm6, %v510_v38, %v202_v25  ;;  %v214_v60 = vsel %vm827_vm1, %v204_v52, %v605_v44  ;;  %vm828_vm4 = vmmov %vm823_vm7  ;;  %v220_v30 = vsel %vm841_vm8, %v210_v7, %v474_v21 }
  0xce   :  { %v280_v15 = vsel %vm634_vm2, %v166_v27, %v216_v36  ;;  %v281_v22 = vsel %vm638_vm15, %v165_v19, %v215_v35  ;;  %v164_v38 = vsel %vm828_vm4, %v468_v18, %v496_v33  ;;  %vm332_vm15 = vcmask 1043456   ;;  %vm842_vm2 = vmmov %vm828_vm4 }
  0xcf   :  { %v310_v24 = vsel %vm301_vm14, %v252_v48, %v281_v22  ;;  %v253_v48 = vsel %vm595_vm3, %v436_v0, %v564_v4  ;;  %v282_v34 = vsel %vm630_vm13, %v164_v38, %v214_v60  ;;  %v309_v18 = vsel %vm642_vm5, %v251_v62, %v280_v15  ;;  %vm840_vm13 = vmmov %vm828_vm4 }
  0xd0   :  { %v325_v59 = vrot.slane %v310_v24, 6  ;;  %vm829_vm14 = vcmask 1041408   ;;  %vm699_vm3 = vcmp.eq.s32.totalorder %v287_v23, 1  ;;  %vm710_vm5 = vcmp.eq.s32.totalorder %v265_v46, 1  ;;  %vm843_vm7 = vmmov %vm842_vm2 }
  0xd1   :  { %v163_v53 = vsel %vm840_vm13, %v496_v33, %v494_v32  ;;  %v311_v40 = vsel %vm302_vm12, %v253_v48, %v282_v34  ;;  %vm304_vm11 = vcmp.eq.s32.totalorder %v295_v51, 1  ;;  %vm844_vm6 = vmmov %vm827_vm1  ;;  %v322_v21 = vrot.slane %v306_v43, 6 }
  0xd2   :  { %v334_v39 = vsel %vm829_vm14, %v309_v18, %v325_v59 }
  0xd4   :  { %v160_v61 = vpop.permute.xlu1 %159  ;;  %v208_v4 = vpop.permute.xlu0 %207 }
  0xd5   :  { %v162_v28 = vsel %vm842_vm2, %v494_v32, %v160_v61  ;;  %v170_v16 = vsel %vm843_vm7, %v160_v61, %v472_v20  ;;  %v212_v2 = vsel %vm844_vm6, %v208_v4, %v210_v7  ;;  %v213_v33 = vsel %vm827_vm1, %v605_v44, %v208_v4 }
  0xd6   :  { %v276_v1 = vsel %vm695_vm10, %v170_v16, %v220_v30  ;;  %v283_v3 = vsel %vm710_vm5, %v163_v53, %v213_v33  ;;  %v284_v32 = vsel %vm714_vm9, %v162_v28, %v212_v2  ;;  %v326_v44 = vrot.slane %v311_v40, 4 }
  0xd7   :  { %v305_v20 = vsel %vm699_vm3, %v247_v11, %v276_v1  ;;  %v312_v41 = vsel %vm718_vm0, %v254_v13, %v283_v3  ;;  %v313_v5 = vsel %vm304_vm11, %v255_v12, %v284_v32  ;;  %vm848_vm10 = vcmask 1041408  }
  0xd8   :  { %v329_v54 = vsel %vm848_vm10, %v305_v20, %v322_v21  ;;  %v327_v9 = vrot.slane %v312_v41, 2  ;;  %341 = vst [vmem:[%s781_s2 + $0x10] sm:$0x3] %v313_v5  ;;  %vm849_vm3 = vcmask 1045508  }
  0xd9   :  { %v333_v63 = vsel %vm332_vm15, %v329_v54, %v628_v49 }
  0xda   :  { %v335_v11 = vsel %vm849_vm3, %v326_v44, %v327_v9  ;;  %339 = vst [vmem:[%s781_s2] sm:$0xff] %v333_v63 }
  0xdb   :  { %v336_v47 = vsel %vm332_vm15, %v334_v39, %v335_v11 }
  0xdc   :  { %340 = vst [vmem:[%s781_s2 + $0x8] sm:$0xff] %v336_v47 }

</bundles_post_ra>
